<compile_context>
chip_gen: v7x
topology: tpu7x:2x2x1
jax: 0.10.0
libtpu: 0.0.40
codegen_flags: <defaults>
</compile_context>

<pallas_src>
import functools

import jax
import jax.numpy as jnp
from jax.experimental import pallas as pl
from jax.experimental.pallas import tpu as pltpu

BN_EPS = 1e-5

_VMEM_BUDGET = 48 * 1024 * 1024   # keep per-block footprint well under v7x's 64 MiB physical
_VMEM_CAP = 64 * 1024 * 1024      # never request more scoped VMEM than v7x physical
_SMALL_HW = 512                   # below this, block several images per grid step
_TARGET_PIX = 1024                # aim for ~this many pixels of work per grid step
_MAX_BN = 8                       # cap in-kernel unroll over images


def _round_up(x, m):
    return ((x + m - 1) // m) * m


def _root_kernel(*refs, num_children, residual, bn):
    """One grid step of the fused 1x1-conv + BN + (residual) + ReLU.

    refs layout:
      x_refs[i]  : (BN, C_i, TM)  child i pixels (channels on sublanes, pixels on lanes)
      w_refs[i]  : (Cout, C_i)    BN-scale-folded weight slice for child i
      shift_ref  : (Cout, 1)      folded BN shift (beta - mean * scale)
      o_ref      : (BN, Cout, TM)
    """
    x_refs = refs[:num_children]
    w_refs = refs[num_children:2 * num_children]
    shift_ref = refs[2 * num_children]
    o_ref = refs[2 * num_children + 1]

    shift = shift_ref[...]                       # (Cout, 1) broadcast over lanes
    for b in range(bn):                          # bn small & static -> unrolled
        x0 = x_refs[0][b]                        # (C_0, TM)
        y = jnp.dot(w_refs[0][...], x0, preferred_element_type=jnp.float32)
        for i in range(1, num_children):
            y = y + jnp.dot(w_refs[i][...], x_refs[i][b],
                            preferred_element_type=jnp.float32)
        y = y + shift
        if residual:
            y = y + x0.astype(jnp.float32)       # children[0] tile already resident
        o_ref[b] = jnp.maximum(y, 0.0).astype(o_ref.dtype)


def _choose_tiling(n, hw, cin, cout, x_bytes, w_bytes, tm_max):
    """Pick (bn, tm) = (#images per block, #pixels per block) and report footprint."""
    tm_max = max(512, _round_up(tm_max, 128))

    def footprint(bn, tm):
        # children + output double-buffered by the pipeline; weights counted
        # conservatively as double-buffered (fallback path), shift negligible.
        return (2 * bn * (cin + cout) * tm * x_bytes
                + 2 * cout * cin * w_bytes + cout * 4)

    if hw <= _SMALL_HW:
        # Small spatial (14x14 / 7x7 root stages): full-HW pixel block, batch
        # several images per step to amortize per-step pipeline overhead.
        tm = hw
        bn = max(1, min(n, _TARGET_PIX // max(hw, 1), _MAX_BN))
        if n > 1:
            bn = min(bn, -(-n // 2))             # keep >=2 batch blocks (megacore)
        while footprint(bn, tm) > _VMEM_BUDGET and bn > 1:
            bn = max(1, bn // 2)
    else:
        bn = 1
        tm = hw if hw <= tm_max else tm_max
        if tm == hw and n < 2:
            # Single image + single pixel block would idle one v7x TensorCore.
            tm = _round_up(-(-hw // 2), 128)
        while footprint(bn, tm) > _VMEM_BUDGET and tm > 512:
            tm = max(512, _round_up(tm // 2, 128))
    return bn, tm, footprint(bn, tm)


def root_forward(inputs, weight, gamma, beta, running_mean, running_var,
                 *, residual, tm_max=2048, vmem_limit_bytes=None):
    """Root.forward(*inputs).

    inputs: list of NCHW arrays (same N, H, W).
    weight: (Cout, Cin) 1x1-conv weight (PyTorch (Cout, Cin, 1, 1) squeezed),
            with Cin = sum of children channel counts.
    """
    n, _, h, w = inputs[0].shape
    for x in inputs:
        assert x.shape[0] == n and x.shape[2:] == (h, w), "children must share N,H,W"
    cout, cin = weight.shape
    hw = h * w
    c_sizes = [int(x.shape[1]) for x in inputs]
    assert sum(c_sizes) == cin, "weight Cin must match concatenated children"
    if residual:
        assert c_sizes[0] == cout, "residual requires children[0] channels == out_channels"

    x_dtype = inputs[0].dtype
    x_bytes = jnp.dtype(x_dtype).itemsize
    # bf16 inputs -> bf16 weights (native MXU path, halves weight + HBM bytes);
    # otherwise keep everything f32.  Accumulation is always f32.
    w_dtype = x_dtype if x_dtype == jnp.bfloat16 else jnp.float32
    w_bytes = jnp.dtype(w_dtype).itemsize

    # Fold BN (inference mode) into the weight + a per-channel shift.
    scale = (gamma.astype(jnp.float32) /
             jnp.sqrt(running_var.astype(jnp.float32) + BN_EPS))          # (Cout,)
    shift = (beta.astype(jnp.float32) -
             running_mean.astype(jnp.float32) * scale).reshape(cout, 1)   # (Cout, 1)
    w_scaled = weight.astype(jnp.float32) * scale[:, None]                # (Cout, Cin)

    # Per-child weight slices (tiny; the only "glue" work done host-side).
    w_children = []
    off = 0
    for c in c_sizes:
        w_children.append(w_scaled[:, off:off + c].astype(w_dtype))
        off += c

    # Free reshapes: NCHW -> (N, C_i, H*W); pixels land on the lane axis.
    xs = [x.reshape(n, c, hw) for x, c in zip(inputs, c_sizes)]

    bn, tm, fp = _choose_tiling(n, hw, cin, cout, x_bytes, w_bytes, tm_max)
    grid = (pl.cdiv(n, bn), pl.cdiv(hw, tm))

    if vmem_limit_bytes is None:
        vmem_limit_bytes = int(min(max(2 * fp + (1 << 20), 32 << 20), _VMEM_CAP))

    # Advisory cost for XLA scheduling around this memory-bound custom call.
    cost = pl.CostEstimate(
        flops=2 * n * hw * cin * cout,
        transcendentals=0,
        bytes_accessed=(cin + cout) * n * hw * x_bytes + cout * cin * w_bytes + cout * 4,
    )

    kernel = functools.partial(_root_kernel, num_children=len(inputs),
                               residual=residual, bn=bn)
    out_shape = jax.ShapeDtypeStruct((n, cout, hw), x_dtype)
    compiler_params = pltpu.CompilerParams(
        dimension_semantics=("parallel", "parallel"),
        vmem_limit_bytes=vmem_limit_bytes)

    def _build_and_call(single_buffer_consts):
        const_kwargs = (
            {"pipeline_mode": pl.Buffered(1)} if single_buffer_consts else {})
        in_specs = []
        for c in c_sizes:                        # children: (BN, C_i, TM) blocks
            in_specs.append(pl.BlockSpec((bn, c, tm), lambda b, m: (b, 0, m)))
        for wc in w_children:                    # weights: whole (Cout, C_i), resident
            in_specs.append(pl.BlockSpec(wc.shape, lambda b, m: (0, 0),
                                         **const_kwargs))
        in_specs.append(pl.BlockSpec((cout, 1), lambda b, m: (0, 0),
                                     **const_kwargs))
        return pl.pallas_call(
            kernel,
            out_shape=out_shape,
            grid=grid,
            in_specs=in_specs,
            out_specs=pl.BlockSpec((bn, cout, tm), lambda b, m: (b, 0, m)),
            compiler_params=compiler_params,
            cost_estimate=cost,
        )(*xs, *w_children, shift)

    try:
        out = _build_and_call(True)
    except Exception:
        # Fallback if pipeline_mode=pl.Buffered(1) is rejected by this Pallas
        # build; only costs the (small) extra double-buffered weight VMEM.
        out = _build_and_call(False)

    return out.reshape(n, cout, h, w)            # free reshape back to NCHW


def _reference(inputs, weight, gamma, beta, mean, var, residual):
    x_cat = jnp.concatenate(inputs, axis=1)
    feats = jnp.einsum("nchw,oc->nohw", x_cat, weight)
    scale = gamma / jnp.sqrt(var + BN_EPS)
    shift = beta - mean * scale
    feats = feats * scale[None, :, None, None] + shift[None, :, None, None]
    if residual:
        feats = feats + inputs[0]
    return jnp.maximum(feats, 0.0)


if __name__ == "__main__":
    base_key = jax.random.PRNGKey(0)

    def run_case(case_idx, n, c_each, h, w, cout, residual):
        ks = jax.random.split(jax.random.fold_in(base_key, case_idx), 7)
        x1 = jax.random.normal(ks[0], (n, c_each, h, w), dtype=jnp.float32)
        x2 = jax.random.normal(ks[1], (n, c_each, h, w), dtype=jnp.float32)
        cin = 2 * c_each
        weight = jax.random.normal(ks[2], (cout, cin), dtype=jnp.float32) * 0.1
        gamma = 1.0 + 0.1 * jax.random.normal(ks[3], (cout,), dtype=jnp.float32)
        beta = 0.1 * jax.random.normal(ks[4], (cout,), dtype=jnp.float32)
        mean = 0.1 * jax.random.normal(ks[5], (cout,), dtype=jnp.float32)
        var = jnp.abs(1.0 + 0.1 * jax.random.normal(ks[6], (cout,), dtype=jnp.float32))

        out = root_forward([x1, x2], weight, gamma, beta, mean, var,
                           residual=residual)
        jax.block_until_ready(out)

        ref = _reference([x1, x2], weight, gamma, beta, mean, var, residual)
        assert out.shape == ref.shape
        assert jnp.allclose(out, ref, atol=1e-4, rtol=1e-4), (
            f"mismatch: case={case_idx} n={n} hw={h*w} residual={residual}")

    # Small-HW path (full-HW pixel block), residual add fused.
    run_case(0, n=2, c_each=4, h=16, w=16, cout=4, residual=True)
    # Same shapes, non-residual epilogue (no residual work in the kernel).
    run_case(1, n=2, c_each=4, h=16, w=16, cout=4, residual=False)
    # Large-HW path: N=1, HW=2304 > tm => 2 pixel blocks incl. a masked tail.
    run_case(2, n=1, c_each=4, h=48, w=48, cout=4, residual=True)

    print("KERNEL_OK")
</pallas_src>

<mosaic_0001>
module attributes {stable_mosaic.version = 11 : i64} {
  func.func @_root_kernel(%arg0: i32, %arg1: i32, %arg2: memref<1x4x256xf32, #tpu.memory_space<vmem>>, %arg3: memref<1x4x256xf32, #tpu.memory_space<vmem>>, %arg4: memref<4x4xf32, #tpu.memory_space<vmem>>, %arg5: memref<4x4xf32, #tpu.memory_space<vmem>>, %arg6: memref<4x1xf32, #tpu.memory_space<vmem>>, %arg7: memref<1x4x256xf32, #tpu.memory_space<vmem>>) attributes {dimension_semantics = [#tpu.dimension_semantics<parallel>, #tpu.dimension_semantics<parallel>], iteration_bounds = array<i64: 2, 1>, scalar_prefetch = 0 : i64, scratch_operands = 0 : i64, tpu.core_type = #tpu.core_type<tc>, window_params = [{transform_indices = @transform_0, window_bounds = array<i64: 1, 4, 256>}, {transform_indices = @transform_1, window_bounds = array<i64: 1, 4, 256>}, {pipeline_mode = #tpu.pipeline_mode<synchronous>, transform_indices = @transform_2, window_bounds = array<i64: 4, 4>}, {pipeline_mode = #tpu.pipeline_mode<synchronous>, transform_indices = @transform_3, window_bounds = array<i64: 4, 4>}, {pipeline_mode = #tpu.pipeline_mode<synchronous>, transform_indices = @transform_4, window_bounds = array<i64: 4, 1>}, {transform_indices = @transform_5, window_bounds = array<i64: 1, 4, 256>}]} {
    %c0 = arith.constant 0 : index
    %c0_0 = arith.constant 0 : index
    %0 = vector.load %arg6[%c0, %c0_0] : memref<4x1xf32, #tpu.memory_space<vmem>>, vector<4x1xf32>
    %c0_1 = arith.constant 0 : index
    %c0_2 = arith.constant 0 : index
    %c0_3 = arith.constant 0 : index
    %1 = vector.load %arg2[%c0_1, %c0_2, %c0_3] : memref<1x4x256xf32, #tpu.memory_space<vmem>>, vector<1x4x256xf32>
    %2 = vector.shape_cast %1 : vector<1x4x256xf32> to vector<4x256xf32>
    %c0_4 = arith.constant 0 : index
    %c0_5 = arith.constant 0 : index
    %3 = vector.load %arg4[%c0_4, %c0_5] : memref<4x4xf32, #tpu.memory_space<vmem>>, vector<4x4xf32>
    %cst = arith.constant dense<0.000000e+00> : vector<4x256xf32>
    %4 = tpu.matmul %3, %2, %cst {dimension_numbers = #tpu.dot_dimension_numbers<[1], [0], [0], [1], [0, 0, 1, 1], [], []>} : vector<4x4xf32>, vector<4x256xf32>, vector<4x256xf32> -> vector<4x256xf32>
    %c0_6 = arith.constant 0 : index
    %c0_7 = arith.constant 0 : index
    %5 = vector.load %arg5[%c0_6, %c0_7] : memref<4x4xf32, #tpu.memory_space<vmem>>, vector<4x4xf32>
    %c0_8 = arith.constant 0 : index
    %c0_9 = arith.constant 0 : index
    %c0_10 = arith.constant 0 : index
    %6 = vector.load %arg3[%c0_8, %c0_9, %c0_10] : memref<1x4x256xf32, #tpu.memory_space<vmem>>, vector<1x4x256xf32>
    %7 = vector.shape_cast %6 : vector<1x4x256xf32> to vector<4x256xf32>
    %cst_11 = arith.constant dense<0.000000e+00> : vector<4x256xf32>
    %8 = tpu.matmul %5, %7, %cst_11 {dimension_numbers = #tpu.dot_dimension_numbers<[1], [0], [0], [1], [0, 0, 1, 1], [], []>} : vector<4x4xf32>, vector<4x256xf32>, vector<4x256xf32> -> vector<4x256xf32>
    %9 = arith.addf %4, %8 : vector<4x256xf32>
    %10 = vector.broadcast %0 : vector<4x1xf32> to vector<4x256xf32>
    %11 = arith.addf %9, %10 : vector<4x256xf32>
    %12 = arith.addf %11, %2 : vector<4x256xf32>
    %cst_12 = arith.constant 0.000000e+00 : f32
    %13 = vector.broadcast %cst_12 : f32 to vector<4x256xf32>
    %14 = arith.maximumf %12, %13 : vector<4x256xf32>
    %c0_13 = arith.constant 0 : index
    %c0_14 = arith.constant 0 : index
    %c0_15 = arith.constant 0 : index
    %15 = vector.load %arg7[%c0_13, %c0_14, %c0_15] : memref<1x4x256xf32, #tpu.memory_space<vmem>>, vector<1x4x256xf32>
    %16 = vector.shape_cast %15 : vector<1x4x256xf32> to vector<4x256xf32>
    %17 = vector.shape_cast %14 : vector<4x256xf32> to vector<1x4x256xf32>
    tpu.vector_store %arg7[%c0_13, %c0_14, %c0_15], %17 {strides = array<i32>} : memref<1x4x256xf32, #tpu.memory_space<vmem>>, vector<1x4x256xf32>,
    return
  }
  func.func @transform_0(%arg0: i32, %arg1: i32) -> (i32, i32, i32) {
    %c0_i32 = arith.constant 0 : i32
    %c0_i32_0 = arith.constant 0 : i32
    return %arg0, %c0_i32, %arg1 : i32, i32, i32
  }
  func.func @transform_1(%arg0: i32, %arg1: i32) -> (i32, i32, i32) {
    %c0_i32 = arith.constant 0 : i32
    %c0_i32_0 = arith.constant 0 : i32
    return %arg0, %c0_i32, %arg1 : i32, i32, i32
  }
  func.func @transform_2(%arg0: i32, %arg1: i32) -> (i32, i32) {
    %c0_i32 = arith.constant 0 : i32
    %c0_i32_0 = arith.constant 0 : i32
    %c0_i32_1 = arith.constant 0 : i32
    return %c0_i32, %c0_i32_0 : i32, i32
  }
  func.func @transform_3(%arg0: i32, %arg1: i32) -> (i32, i32) {
    %c0_i32 = arith.constant 0 : i32
    %c0_i32_0 = arith.constant 0 : i32
    %c0_i32_1 = arith.constant 0 : i32
    return %c0_i32, %c0_i32_0 : i32, i32
  }
  func.func @transform_4(%arg0: i32, %arg1: i32) -> (i32, i32) {
    %c0_i32 = arith.constant 0 : i32
    %c0_i32_0 = arith.constant 0 : i32
    %c0_i32_1 = arith.constant 0 : i32
    return %c0_i32, %c0_i32_0 : i32, i32
  }
  func.func @transform_5(%arg0: i32, %arg1: i32) -> (i32, i32, i32) {
    %c0_i32 = arith.constant 0 : i32
    %c0_i32_0 = arith.constant 0 : i32
    return %arg0, %c0_i32, %arg1 : i32, i32, i32
  }
}

module attributes {stable_mosaic.version = 11 : i64} {
  func.func @_root_kernel(%arg0: i32, %arg1: i32, %arg2: memref<1x4x256xf32, #tpu.memory_space<vmem>>, %arg3: memref<1x4x256xf32, #tpu.memory_space<vmem>>, %arg4: memref<4x4xf32, #tpu.memory_space<vmem>>, %arg5: memref<4x4xf32, #tpu.memory_space<vmem>>, %arg6: memref<4x1xf32, #tpu.memory_space<vmem>>, %arg7: memref<1x4x256xf32, #tpu.memory_space<vmem>>) attributes {dimension_semantics = [#tpu.dimension_semantics<parallel>, #tpu.dimension_semantics<parallel>], iteration_bounds = array<i64: 2, 1>, scalar_prefetch = 0 : i64, scratch_operands = 0 : i64, tpu.core_type = #tpu.core_type<tc>, window_params = [{transform_indices = @transform_0, window_bounds = array<i64: 1, 4, 256>}, {transform_indices = @transform_1, window_bounds = array<i64: 1, 4, 256>}, {pipeline_mode = #tpu.pipeline_mode<synchronous>, transform_indices = @transform_2, window_bounds = array<i64: 4, 4>}, {pipeline_mode = #tpu.pipeline_mode<synchronous>, transform_indices = @transform_3, window_bounds = array<i64: 4, 4>}, {pipeline_mode = #tpu.pipeline_mode<synchronous>, transform_indices = @transform_4, window_bounds = array<i64: 4, 1>}, {transform_indices = @transform_5, window_bounds = array<i64: 1, 4, 256>}]} {
    %c0 = arith.constant 0 : index
    %c0_0 = arith.constant 0 : index
    %0 = vector.load %arg6[%c0, %c0_0] : memref<4x1xf32, #tpu.memory_space<vmem>>, vector<4x1xf32>
    %c0_1 = arith.constant 0 : index
    %c0_2 = arith.constant 0 : index
    %c0_3 = arith.constant 0 : index
    %1 = vector.load %arg2[%c0_1, %c0_2, %c0_3] : memref<1x4x256xf32, #tpu.memory_space<vmem>>, vector<1x4x256xf32>
    %2 = vector.shape_cast %1 : vector<1x4x256xf32> to vector<4x256xf32>
    %c0_4 = arith.constant 0 : index
    %c0_5 = arith.constant 0 : index
    %3 = vector.load %arg4[%c0_4, %c0_5] : memref<4x4xf32, #tpu.memory_space<vmem>>, vector<4x4xf32>
    %cst = arith.constant dense<0.000000e+00> : vector<4x256xf32>
    %4 = tpu.matmul %3, %2, %cst {dimension_numbers = #tpu.dot_dimension_numbers<[1], [0], [0], [1], [0, 0, 1, 1], [], []>} : vector<4x4xf32>, vector<4x256xf32>, vector<4x256xf32> -> vector<4x256xf32>
    %c0_6 = arith.constant 0 : index
    %c0_7 = arith.constant 0 : index
    %5 = vector.load %arg5[%c0_6, %c0_7] : memref<4x4xf32, #tpu.memory_space<vmem>>, vector<4x4xf32>
    %c0_8 = arith.constant 0 : index
    %c0_9 = arith.constant 0 : index
    %c0_10 = arith.constant 0 : index
    %6 = vector.load %arg3[%c0_8, %c0_9, %c0_10] : memref<1x4x256xf32, #tpu.memory_space<vmem>>, vector<1x4x256xf32>
    %7 = vector.shape_cast %6 : vector<1x4x256xf32> to vector<4x256xf32>
    %cst_11 = arith.constant dense<0.000000e+00> : vector<4x256xf32>
    %8 = tpu.matmul %5, %7, %cst_11 {dimension_numbers = #tpu.dot_dimension_numbers<[1], [0], [0], [1], [0, 0, 1, 1], [], []>} : vector<4x4xf32>, vector<4x256xf32>, vector<4x256xf32> -> vector<4x256xf32>
    %9 = arith.addf %4, %8 : vector<4x256xf32>
    %10 = vector.broadcast %0 : vector<4x1xf32> to vector<4x256xf32>
    %11 = arith.addf %9, %10 : vector<4x256xf32>
    %12 = arith.addf %11, %2 : vector<4x256xf32>
    %cst_12 = arith.constant 0.000000e+00 : f32
    %13 = vector.broadcast %cst_12 : f32 to vector<4x256xf32>
    %14 = arith.maximumf %12, %13 : vector<4x256xf32>
    %c0_13 = arith.constant 0 : index
    %c0_14 = arith.constant 0 : index
    %c0_15 = arith.constant 0 : index
    %15 = vector.load %arg7[%c0_13, %c0_14, %c0_15] : memref<1x4x256xf32, #tpu.memory_space<vmem>>, vector<1x4x256xf32>
    %16 = vector.shape_cast %15 : vector<1x4x256xf32> to vector<4x256xf32>
    %17 = vector.shape_cast %14 : vector<4x256xf32> to vector<1x4x256xf32>
    tpu.vector_store %arg7[%c0_13, %c0_14, %c0_15], %17 {strides = array<i32>} : memref<1x4x256xf32, #tpu.memory_space<vmem>>, vector<1x4x256xf32>,
    return
  }
  func.func @transform_0(%arg0: i32, %arg1: i32) -> (i32, i32, i32) {
    %c0_i32 = arith.constant 0 : i32
    %c0_i32_0 = arith.constant 0 : i32
    return %arg0, %c0_i32, %arg1 : i32, i32, i32
  }
  func.func @transform_1(%arg0: i32, %arg1: i32) -> (i32, i32, i32) {
    %c0_i32 = arith.constant 0 : i32
    %c0_i32_0 = arith.constant 0 : i32
    return %arg0, %c0_i32, %arg1 : i32, i32, i32
  }
  func.func @transform_2(%arg0: i32, %arg1: i32) -> (i32, i32) {
    %c0_i32 = arith.constant 0 : i32
    %c0_i32_0 = arith.constant 0 : i32
    %c0_i32_1 = arith.constant 0 : i32
    return %c0_i32, %c0_i32_0 : i32, i32
  }
  func.func @transform_3(%arg0: i32, %arg1: i32) -> (i32, i32) {
    %c0_i32 = arith.constant 0 : i32
    %c0_i32_0 = arith.constant 0 : i32
    %c0_i32_1 = arith.constant 0 : i32
    return %c0_i32, %c0_i32_0 : i32, i32
  }
  func.func @transform_4(%arg0: i32, %arg1: i32) -> (i32, i32) {
    %c0_i32 = arith.constant 0 : i32
    %c0_i32_0 = arith.constant 0 : i32
    %c0_i32_1 = arith.constant 0 : i32
    return %c0_i32, %c0_i32_0 : i32, i32
  }
  func.func @transform_5(%arg0: i32, %arg1: i32) -> (i32, i32, i32) {
    %c0_i32 = arith.constant 0 : i32
    %c0_i32_0 = arith.constant 0 : i32
    return %arg0, %c0_i32, %arg1 : i32, i32, i32
  }
}

</mosaic_0001>

<bundles_post_ra>
// kernel: tpu_custom_call.1
= control target key start
LH: loop header
LB: loop body
LE: loop exit
PB: predicated region body
PF: predicated region fallthrough
CT: control target
= control target key end

     0   :  { %10 = vsyncpa [#allocation3], 0  ;;  %s1134_s0 = inlined_call_operand.hbm [shape: f32[2,4,256], index: 0, kind: input, shape index: {}]   ;;  %s1135_s1 = inlined_call_operand.hbm [shape: f32[2,4,256], index: 1, kind: input, shape index: {}]   ;;  %s1136_s2 = inlined_call_operand.vmem [shape: f32[4,4], index: 2, kind: input, shape index: {}]   ;;  %s1137_s3 = inlined_call_operand.vmem [shape: f32[4,4], index: 3, kind: input, shape index: {}]   ;;  %s1138_s4 = inlined_call_operand.vmem [shape: f32[4,1], index: 4, kind: input, shape index: {}]   ;;  %s1139_s5 = inlined_call_operand.hbm [shape: f32[2,4,256], index: 5, kind: output, shape index: {}]  }
   0x1   :  { %12 = vsyncpa [#allocation3 + $0x1], 0 }
   0x2   :  { %13 = vsyncpa [#allocation6], 0 }
   0x3   :  { %15 = vsyncpa [#allocation6 + $0x1], 0 }
   0x4   :  { %16 = vsyncpa [#allocation4], 0 }
   0x5   :  { %18 = vsyncpa [#allocation4 + $0x1], 0  ;;  %s900_s18 = smov 0   ;;  %s902_s19 = smov 0  }
   0x6   :  { %s904_s20 = smov 0   ;;  %s906_s21 = smov 0  }
   0x7   :  { %s908_s22 = smov 0   ;;  %s910_s23 = smov 0  }
   0x8 LB: > { %s615_s24 = sadd.s32 4294967295, %s863_s23   ;;  %s616_s25 = sadd.s32 4294967294, %s863_s23   ;;  %s863_s23 = sphi %s910_s23, %s24_s23   ;;  %s859_s22 = sphi %s908_s22, %s1159_s22   ;;  %s855_s21 = sphi %s906_s21, %s1158_s21   ;;  %s851_s20 = sphi %s904_s20, %s1157_s20   ;;  %s847_s19 = sphi %s902_s19, %s1156_s19   ;;  %s843_s18 = sphi %s900_s18, %s1155_s18  }
   0x9   : > { %s36_s26 = sadd.s32 1, %s859_s22  ;;  %s45_s27 = sadd.s32 1, %s851_s20 }
   0xa   : > { %p38_p0 = scmp.ge.s32.totalorder %s36_s26, 2  ;;  %p52_p1 = scmp.ne.s32.totalorder %s851_s20, %s847_s19 }
   0xb   : > { %p53_p2 = scmp.eq.s32.totalorder %s863_s23, 0  ;;  %p58_p3 = scmp.ne.s32.totalorder %s847_s19, %s843_s18 }
   0xc   : > { %s1161_s26 = smov (%p38_p0, %s36_s26), 0  ;;  %p59_p5 = scmp.eq.s32.totalorder %s615_s24, 0 }
   0xd   : > { %p941_p4 = por %p53_p2, %p52_p1  ;;  %s40_s29 = ssub.s32 %s859_s22, %s1161_s26 }
   0xe   : > { %p175_p6 = scmp.eq.s32.totalorder %s615_s24, 1  ;;  %p43_p7 = scmp.eq.s32.totalorder %s40_s29, 0 }
   0xf   : > { %p947_p8 = por %p59_p5, %p58_p3  ;;  %p181_p10 = scmp.eq.s32.totalorder %s616_s25, 1 }
  0x10   : > { %p951_p9 = por %p175_p6, %p52_p1  ;;  %p662_p13 = scmp.lt.s32.totalorder %s863_s23, 2 }
  0x11   : > { %s1143_s30 = scalar_select %p947_p8, 1, 0 }
  0x12   : > { %s1144_s6 = scalar_select %p951_p9, 1, 0 }
  0x13   : > { %s956_s7 = scalar_select %p43_p7, %s851_s20, %s45_s27  }
  0x14   : > { %p958_p11 = por %p181_p10, %p58_p3  ;;  %s965_s9 = sand.u32 1, %s851_s20  }
  0x15   : > { %s619_s10 = sshll.u32 %s965_s9, 3  ;;  %s640_s11 = sshll.u32 %s859_s22, 7 }
  0x16   : > { %s1145_s8 = scalar_select %p958_p11, 1, 0 }
  0x17   : > { %s974_s14 = scalar_lea.hbm %s1134_s0, %s640_s11  ;;  %s214_s15 = scalar_lea.vmem [#allocation2], %s619_s10 }
  0x18   : > { %s224_s16 = sshll.u32 %s214_s15, 4  ;;  %p982_p0 = pnand %p662_p13, %p941_p4  ;;  %s978_s16 = int_to_ptr.vmem [resolvable:$true] %s224_s16 }
  0x19   : > { %s211_s24 = scalar_lea.sflag [#allocation3], %s965_s9  ;;  %s717_s25 = scalar_lea.hbm %s974_s14, 128 }
  0x1a   : > { %p718_p3 = scmp.ne.s32.totalorder %s974_s14, %s717_s25  ;;  %p719_p5 = pneg %p982_p0 }
  0x1b   : > { %s722_s28 = scalar_lea.hbm %s1134_s0, 256  ;;  %p723_p4 = scmp.lt.u32.totalorder %s974_s14, %s1134_s0 }
  0x1c   : > { %p720_p6 = pnand %p719_p5, %p718_p3  ;;  %p724_p10 = scmp.lt.u32.totalorder %s722_s28, %s717_s25 }
  0x1d   : > { %p726_p12 = scmp.lt.u32.totalorder %s717_s25, %s974_s14 }
  0x1e   : > { %p721_p7 = pneg %p720_p6  ;;  %p725_p13 = por %p724_p10, %p723_p4 }
  0x20   : > { %p727_p1 = por %p726_p12, %p725_p13 }
  0x22   : > { %p728_p2 = pnand %p727_p1, %p721_p7 }
  0x24   : > { %731 = shalt.err (!%p728_p2)
}
  0x25   : > { %s732_s15 = scalar_lea.vmem %s978_s16, 128  ;;  %s865_s27 = smov [#allocation2]  }
  0x26   : > { %p733_p3 = scmp.ne.s32.totalorder %s978_s16, %s732_s15  ;;  %s737_s29 = sshll.u32 %s865_s27, 4  ;;  %s738_s29 = int_to_ptr.vmem [resolvable:$false] %s737_s29 }
  0x27   : > { %s739_s12 = scalar_lea.vmem %s738_s29, 256  ;;  %p740_p9 = scmp.lt.s32.totalorder %s978_s16, %s738_s29 }
  0x28   : > { %p735_p6 = pnand %p733_p3, %p719_p5  ;;  %p741_p4 = scmp.lt.s32.totalorder %s739_s12, %s732_s15 }
  0x2a   : > { %p736_p11 = pneg %p735_p6  ;;  %p742_p10 = por %p741_p4, %p740_p9 }
  0x2c   : > { %p743_p12 = pnand %p742_p10, %p736_p11 }
  0x2e   : > { %746 = shalt.err (!%p743_p12)
}
  0x2f   : > { %654 = dma.hbm_to_vmem [thread:$0]  (!%p982_p0), %s974_s14, 128, %s978_s16, %s211_s24  }
  0x30   : > { %p1147_p1 = scmp.lt.s32.totalorder %s863_s23, 3  ;;  %p1148_p2 = scmp.ge.s32.totalorder %s863_s23, 1 }
  0x31   : > { %s1027_s15 = scalar_lea.hbm %s1135_s1, %s640_s11  ;;  %s235_s27 = scalar_lea.vmem [#allocation5], %s619_s10 }
  0x32   : > { %p1018_p7 = pnand %p1148_p2, %p1147_p1  ;;  %s245_s29 = sshll.u32 %s235_s27, 4  ;;  %s246_s29 = int_to_ptr.vmem [resolvable:$true] %s245_s29 }
  0x33   : > { %s232_s14 = scalar_lea.sflag [#allocation6], %s965_s9  ;;  %s747_s16 = scalar_lea.hbm %s1027_s15, 128 }
  0x34   : > { %s1149_s25 = scalar_select %p1018_p7, 1, 0 }
  0x35   : > { %p748_p9 = scmp.ne.s32.totalorder %s1027_s15, %s747_s16  ;;  %s752_s11 = scalar_lea.hbm %s1135_s1, 256 }
  0x36   : > { %p753_p3 = scmp.lt.u32.totalorder %s1027_s15, %s1135_s1  ;;  %p754_p6 = scmp.lt.u32.totalorder %s752_s11, %s747_s16 }
  0x37   : > { %p750_p11 = pnand %p748_p9, %p719_p5  ;;  %p756_p10 = scmp.lt.u32.totalorder %s747_s16, %s1027_s15 }
  0x38   : > { %p755_p4 = por %p754_p6, %p753_p3 }
  0x39   : > { %p751_p13 = pneg %p750_p11 }
  0x3a   : > { %p757_p12 = por %p756_p10, %p755_p4 }
  0x3c   : > { %p758_p1 = pnand %p757_p12, %p751_p13 }
  0x3e   : > { %761 = shalt.err (!%p758_p1)
}
  0x3f   : > { %s762_s9 = scalar_lea.vmem %s246_s29, 128  ;;  %s866_s10 = smov [#allocation5]  }
  0x40   : > { %p763_p2 = scmp.ne.s32.totalorder %s246_s29, %s762_s9  ;;  %s767_s27 = sshll.u32 %s866_s10, 4  ;;  %s768_s27 = int_to_ptr.vmem [resolvable:$false] %s767_s27 }
  0x41   : > { %s769_s24 = scalar_lea.vmem %s768_s27, 256  ;;  %p770_p8 = scmp.lt.s32.totalorder %s246_s29, %s768_s27 }
  0x42   : > { %p765_p9 = pnand %p763_p2, %p719_p5  ;;  %p771_p7 = scmp.lt.s32.totalorder %s769_s24, %s762_s9 }
  0x44   : > { %p766_p11 = pneg %p765_p9  ;;  %p772_p3 = por %p771_p7, %p770_p8 }
  0x46   : > { %p773_p6 = pnand %p772_p3, %p766_p11 }
  0x48   : > { %776 = shalt.err (!%p773_p6)
}
  0x49   : > { %657 = dma.hbm_to_vmem [thread:$0]  (!%p982_p0), %s1027_s15, 128, %s246_s29, %s232_s14  }
  0x4a   : > { %p1150_p13 = scmp.ne.s32.totalorder %s1149_s25, 0 }
  0x4b   : > { %s1054_s16 = sand.u32 (!%p1150_p13), 1, %s847_s19   ;;  %p1151_p8 = scmp.ne.s32.totalorder (!%p1150_p13), %s1143_s30, 0 }
  0x4c   : > { %254 = sbr.rel (%p1150_p13) target bundleno = 329 (0x149), region = 40  ;;  %s1057_s12 = sshll.u32 (!%p1150_p13), %s1054_s16, 3 }
  0x4d   : > { %s257_s11 = scalar_lea.sflag (!%p1150_p13), [#allocation3], %s1054_s16  ;;  %s260_s28 = scalar_lea.vmem (!%p1150_p13), [#allocation2], %s1057_s12 }
  0x53   : > { %830 = dma.done.wait (%p1151_p8), %s257_s11, 128  }
  0x54   : > { %832 = vsyncadd (%p1151_p8), %s257_s11, 4294967168  ;;  %s266_s17 = scalar_lea.sflag [#allocation6], %s1054_s16  ;;  %s269_s25 = scalar_lea.vmem [#allocation5], %s1057_s12 }
  0x55   : > { %834 = dma.done.wait (%p1151_p8), %s266_s17, 128  }
  0x56   : > { %836 = vsyncadd (%p1151_p8), %s266_s17, 4294967168  ;;  %v867_v0 = vmov 0.0   ;;  %v868_v1 = vmov 0   ;;  %v308_v2 = vld [vmem:[%s269_s25] sm:$0xff]  ;;  %vm315_vm0 = vcmask 1043456   ;;  %v305_v3 = vld [vmem:[%s260_s28] sm:$0xff] }
  0x57   : > { %384 = vmatprep.mubr.f32.mxu1 %v867_v0  ;;  %464 = vmatprep.mubr.f32.mxu0 %v867_v0  ;;  %v310_v4 = vcombine.high %v308_v2, %v308_v2  ;;  %v392_v5 = vcombine.high %v305_v3, %v305_v3  ;;  %v304_v6 = vld [vmem:[%s1138_s4] sm:$0xf]  ;;  %vm311_vm1 = vcmask 31744   ;;  %s642_s10 = sshll.u32 %s855_s21, 7  ;;  %s300_s27 = scalar_lea.vmem [#allocation7], %s1057_s12 }
  0x58   : > { %714 = vset.pattern.permute.xlu0 %v868_v1  ;;  %v307_v7 = vld [vmem:[%s1137_s3] sm:$0xf]  ;;  %s505_s24 = sshll.u32 %s300_s27, 4  ;;  %s1085_s17 = scalar_lea.hbm %s1139_s5, %s642_s10  ;;  %s1087_s24 = int_to_ptr.vmem [resolvable:$true] %s505_s24 }
  0x59   : > { %v306_v8 = vld [vmem:[%s1136_s2] sm:$0xf]  ;;  %473 = vperm.xlu0 %714, %v304_v6   ;;  %629 = vmatprep.subr.msk.mxu1 %vm315_vm0, %v310_v4  ;;  %s489_s25 = scalar_lea.sflag [#allocation4], %s1054_s16  ;;  %s777_s15 = scalar_lea.vmem %s1087_s24, 128 }
  0x5a   : > { %632 = vmatprep.subr.msk.mxu0 %vm315_vm0, %v392_v5  ;;  %630 = vmatpush1.msk.msra.mxu1 %vm315_vm0, %v308_v2  ;;  %p778_p0 = scmp.ne.s32.totalorder %s1087_s24, %s777_s15  ;;  %p1152_p5 = scmp.ne.s32.totalorder %s1144_s6, 0 }
  0x5b   : > { %633 = vmatpush1.msk.msra.mxu0 %vm315_vm0, %v305_v3  ;;  %631 = vmatmul.mubr.msk.f32.vlgmr.msra.gmra.mrb[0].mxu1 %vm311_vm1, %v307_v7  ;;  %s869_s21 = smov [#allocation7]  }
  0x5c   : > { %634 = vmatmul.mubr.msk.f32.vlgmr.msra.gmra.mrb[0].mxu0 %vm311_vm1, %v306_v8  ;;  %p779_p7 = pnand %p778_p0, %p1152_p5  ;;  %s781_s12 = sshll.u32 %s869_s21, 4  ;;  %s782_s12 = int_to_ptr.vmem [resolvable:$false] %s781_s12 }
  0x5d   : > { %s783_s29 = scalar_lea.vmem %s782_s12, 256  ;;  %p784_p10 = scmp.lt.s32.totalorder %s1087_s24, %s782_s12 }
  0x5e   : > { %p780_p4 = pneg %p779_p7  ;;  %p785_p12 = scmp.lt.s32.totalorder %s783_s29, %s777_s15 }
  0x60   : > { %p786_p1 = por %p785_p12, %p784_p10 }
  0x62   : > { %p787_p2 = pnand %p786_p1, %p780_p4 }
  0xd8   : > { %v474_v9 = vpop.permute.xlu0 %473 }
 0x12e   : > { %v386_v10 = vpop.f32.mrb[0].mxu1 }
 0x12f   : > { %v466_v11 = vpop.f32.mrb[0].mxu0  ;;  %v388_v13 = vpop.f32.mrb[1].mxu1 }
 0x130   : > { %v467_v12 = vadd.f32 %v466_v11, %v386_v10  ;;  %v468_v14 = vpop.f32.mrb[1].mxu0 }
 0x131   : > { %v469_v15 = vadd.f32 %v468_v14, %v388_v13 }
 0x132   : > { %v476_v16 = vadd.f32 %v474_v9, %v467_v12 }
 0x133   : > { %v477_v17 = vadd.f32 %v474_v9, %v469_v15 }
 0x134   : > { %v479_v18 = vadd.f32 %v476_v16, %v305_v3 }
 0x135   : > { %v480_v19 = vadd.f32 %v477_v17, %v392_v5 }
 0x136   : > { %v481_v20 = vmax.f32 %v479_v18, 0.0 }
 0x137   : > { %v482_v21 = vmax.f32 %v480_v19, 0.0 }
 0x139   : > { %v485_v22 = vcombine.low %v481_v20, %v482_v21 }
 0x13b   : > { %487 = vst [vmem:[%s300_s27] sm:$0xff] %v485_v22 }
 0x13c   : > { %790 = shalt.err (!%p787_p2)
}
 0x13d   : > { %s791_s16 = scalar_lea.hbm %s1085_s17, 128  ;;  %s795_s30 = scalar_lea.hbm %s1139_s5, 256 }
 0x13e   : > { %p792_p9 = scmp.ne.s32.totalorder %s1085_s17, %s791_s16  ;;  %p796_p6 = scmp.lt.u32.totalorder %s1085_s17, %s1139_s5 }
 0x13f   : > { %p797_p13 = scmp.lt.u32.totalorder %s795_s30, %s791_s16  ;;  %p799_p0 = scmp.lt.u32.totalorder %s791_s16, %s1085_s17 }
 0x140   : > { %p793_p11 = pnand %p792_p9, %p1152_p5 }
 0x141   : > { %p798_p8 = por %p797_p13, %p796_p6 }
 0x142   : > { %p794_p3 = pneg %p793_p11 }
 0x143   : > { %p800_p7 = por %p799_p0, %p798_p8 }
 0x145   : > { %p801_p4 = pnand %p800_p7, %p794_p3 }
 0x147   : > { %804 = shalt.err (!%p801_p4)
}
 0x148   : > { %649 = dma.vmem_to_hbm [thread:$0]  (%p1152_p5), %s1087_s24, 128, %s1085_s17, %s489_s25  }
 0x149 PF: > { %s517_s27 = sand.u32 1, %s843_s18   ;;  %p1153_p10 = scmp.ne.s32.totalorder %s1145_s8, 0 }
 0x14a   : > { %p1154_p12 = scmp.ge.s32.totalorder %s863_s23, 2  ;;  %s518_s11 = scalar_lea.sflag [#allocation4], %s517_s27 }
 0x14c   : > { %p659_p1 = pnand %p1154_p12, %p1153_p10 }
 0x14e   : > { %838 = dma.done.wait (!%p659_p1), %s518_s11, 128  }
 0x14f   : > { %840 = vsyncadd (!%p659_p1), %s518_s11, 4294967168  ;;  %s24_s23 = sadd.s32 1, %s863_s23   ;;  %s1155_s18 = smov %s847_s19 }
 0x150   : > { %p21_p2 = scmp.ge.s32.totalorder %s24_s23, 4   ;;  %s1156_s19 = smov %s851_s20 }
 0x151   : > { %s1157_s20 = smov %s956_s7  ;;  %s1158_s21 = smov %s859_s22 }
 0x152   : > { %s1159_s22 = smov %s1161_s26  ;;  %23 = sbr.rel (!%p21_p2) target bundleno = 8 (0x8), region = 98 }
 0x159   :  { %523 = vsyncpa [#allocation3], 1 }
 0x15a   :  { %525 = vsyncpa [#allocation3 + $0x1], 1 }
 0x15b   :  { %526 = vsyncpa [#allocation6], 1 }
 0x15c   :  { %528 = vsyncpa [#allocation6 + $0x1], 1 }
 0x15d   :  { %529 = vsyncpa [#allocation4], 1 }
 0x15e   :  { %531 = vsyncpa [#allocation4 + $0x1], 1 }

// kernel: tpu_custom_call.1
= control target key start
LH: loop header
LB: loop body
LE: loop exit
PB: predicated region body
PF: predicated region fallthrough
CT: control target
= control target key end

     0   :  { %10 = vsyncpa [#allocation3], 0  ;;  %s1134_s0 = inlined_call_operand.hbm [shape: f32[2,4,256], index: 0, kind: input, shape index: {}]   ;;  %s1135_s1 = inlined_call_operand.hbm [shape: f32[2,4,256], index: 1, kind: input, shape index: {}]   ;;  %s1136_s2 = inlined_call_operand.vmem [shape: f32[4,4], index: 2, kind: input, shape index: {}]   ;;  %s1137_s3 = inlined_call_operand.vmem [shape: f32[4,4], index: 3, kind: input, shape index: {}]   ;;  %s1138_s4 = inlined_call_operand.vmem [shape: f32[4,1], index: 4, kind: input, shape index: {}]   ;;  %s1139_s5 = inlined_call_operand.hbm [shape: f32[2,4,256], index: 5, kind: output, shape index: {}]  }
   0x1   :  { %12 = vsyncpa [#allocation3 + $0x1], 0 }
   0x2   :  { %13 = vsyncpa [#allocation6], 0 }
   0x3   :  { %15 = vsyncpa [#allocation6 + $0x1], 0 }
   0x4   :  { %16 = vsyncpa [#allocation4], 0 }
   0x5   :  { %18 = vsyncpa [#allocation4 + $0x1], 0  ;;  %s900_s18 = smov 0   ;;  %s902_s19 = smov 0  }
   0x6   :  { %s904_s20 = smov 0   ;;  %s906_s21 = smov 0  }
   0x7   :  { %s908_s22 = smov 0   ;;  %s910_s23 = smov 0  }
   0x8 LB: > { %s615_s24 = sadd.s32 4294967295, %s863_s23   ;;  %s616_s25 = sadd.s32 4294967294, %s863_s23   ;;  %s863_s23 = sphi %s910_s23, %s24_s23   ;;  %s859_s22 = sphi %s908_s22, %s1159_s22   ;;  %s855_s21 = sphi %s906_s21, %s1158_s21   ;;  %s851_s20 = sphi %s904_s20, %s1157_s20   ;;  %s847_s19 = sphi %s902_s19, %s1156_s19   ;;  %s843_s18 = sphi %s900_s18, %s1155_s18  }
   0x9   : > { %s36_s26 = sadd.s32 1, %s859_s22  ;;  %s45_s27 = sadd.s32 1, %s851_s20 }
   0xa   : > { %p38_p0 = scmp.ge.s32.totalorder %s36_s26, 2  ;;  %p52_p1 = scmp.ne.s32.totalorder %s851_s20, %s847_s19 }
   0xb   : > { %p53_p2 = scmp.eq.s32.totalorder %s863_s23, 0  ;;  %p58_p3 = scmp.ne.s32.totalorder %s847_s19, %s843_s18 }
   0xc   : > { %s1161_s26 = smov (%p38_p0, %s36_s26), 0  ;;  %p59_p5 = scmp.eq.s32.totalorder %s615_s24, 0 }
   0xd   : > { %p941_p4 = por %p53_p2, %p52_p1  ;;  %s40_s29 = ssub.s32 %s859_s22, %s1161_s26 }
   0xe   : > { %p175_p6 = scmp.eq.s32.totalorder %s615_s24, 1  ;;  %p43_p7 = scmp.eq.s32.totalorder %s40_s29, 0 }
   0xf   : > { %p947_p8 = por %p59_p5, %p58_p3  ;;  %p181_p10 = scmp.eq.s32.totalorder %s616_s25, 1 }
  0x10   : > { %p951_p9 = por %p175_p6, %p52_p1  ;;  %p662_p13 = scmp.lt.s32.totalorder %s863_s23, 2 }
  0x11   : > { %s1143_s30 = scalar_select %p947_p8, 1, 0 }
  0x12   : > { %s1144_s6 = scalar_select %p951_p9, 1, 0 }
  0x13   : > { %s956_s7 = scalar_select %p43_p7, %s851_s20, %s45_s27  }
  0x14   : > { %p958_p11 = por %p181_p10, %p58_p3  ;;  %s965_s9 = sand.u32 1, %s851_s20  }
  0x15   : > { %s619_s10 = sshll.u32 %s965_s9, 3  ;;  %s640_s11 = sshll.u32 %s859_s22, 7 }
  0x16   : > { %s1145_s8 = scalar_select %p958_p11, 1, 0 }
  0x17   : > { %s974_s14 = scalar_lea.hbm %s1134_s0, %s640_s11  ;;  %s214_s15 = scalar_lea.vmem [#allocation2], %s619_s10 }
  0x18   : > { %s224_s16 = sshll.u32 %s214_s15, 4  ;;  %p982_p0 = pnand %p662_p13, %p941_p4  ;;  %s978_s16 = int_to_ptr.vmem [resolvable:$true] %s224_s16 }
  0x19   : > { %s211_s24 = scalar_lea.sflag [#allocation3], %s965_s9  ;;  %s717_s25 = scalar_lea.hbm %s974_s14, 128 }
  0x1a   : > { %p718_p3 = scmp.ne.s32.totalorder %s974_s14, %s717_s25  ;;  %p719_p5 = pneg %p982_p0 }
  0x1b   : > { %s722_s28 = scalar_lea.hbm %s1134_s0, 256  ;;  %p723_p4 = scmp.lt.u32.totalorder %s974_s14, %s1134_s0 }
  0x1c   : > { %p720_p6 = pnand %p719_p5, %p718_p3  ;;  %p724_p10 = scmp.lt.u32.totalorder %s722_s28, %s717_s25 }
  0x1d   : > { %p726_p12 = scmp.lt.u32.totalorder %s717_s25, %s974_s14 }
  0x1e   : > { %p721_p7 = pneg %p720_p6  ;;  %p725_p13 = por %p724_p10, %p723_p4 }
  0x20   : > { %p727_p1 = por %p726_p12, %p725_p13 }
  0x22   : > { %p728_p2 = pnand %p727_p1, %p721_p7 }
  0x24   : > { %731 = shalt.err (!%p728_p2)
}
  0x25   : > { %s732_s15 = scalar_lea.vmem %s978_s16, 128  ;;  %s865_s27 = smov [#allocation2]  }
  0x26   : > { %p733_p3 = scmp.ne.s32.totalorder %s978_s16, %s732_s15  ;;  %s737_s29 = sshll.u32 %s865_s27, 4  ;;  %s738_s29 = int_to_ptr.vmem [resolvable:$false] %s737_s29 }
  0x27   : > { %s739_s12 = scalar_lea.vmem %s738_s29, 256  ;;  %p740_p9 = scmp.lt.s32.totalorder %s978_s16, %s738_s29 }
  0x28   : > { %p735_p6 = pnand %p733_p3, %p719_p5  ;;  %p741_p4 = scmp.lt.s32.totalorder %s739_s12, %s732_s15 }
  0x2a   : > { %p736_p11 = pneg %p735_p6  ;;  %p742_p10 = por %p741_p4, %p740_p9 }
  0x2c   : > { %p743_p12 = pnand %p742_p10, %p736_p11 }
  0x2e   : > { %746 = shalt.err (!%p743_p12)
}
  0x2f   : > { %654 = dma.hbm_to_vmem [thread:$0]  (!%p982_p0), %s974_s14, 128, %s978_s16, %s211_s24  }
  0x30   : > { %p1147_p1 = scmp.lt.s32.totalorder %s863_s23, 3  ;;  %p1148_p2 = scmp.ge.s32.totalorder %s863_s23, 1 }
  0x31   : > { %s1027_s15 = scalar_lea.hbm %s1135_s1, %s640_s11  ;;  %s235_s27 = scalar_lea.vmem [#allocation5], %s619_s10 }
  0x32   : > { %p1018_p7 = pnand %p1148_p2, %p1147_p1  ;;  %s245_s29 = sshll.u32 %s235_s27, 4  ;;  %s246_s29 = int_to_ptr.vmem [resolvable:$true] %s245_s29 }
  0x33   : > { %s232_s14 = scalar_lea.sflag [#allocation6], %s965_s9  ;;  %s747_s16 = scalar_lea.hbm %s1027_s15, 128 }
  0x34   : > { %s1149_s25 = scalar_select %p1018_p7, 1, 0 }
  0x35   : > { %p748_p9 = scmp.ne.s32.totalorder %s1027_s15, %s747_s16  ;;  %s752_s11 = scalar_lea.hbm %s1135_s1, 256 }
  0x36   : > { %p753_p3 = scmp.lt.u32.totalorder %s1027_s15, %s1135_s1  ;;  %p754_p6 = scmp.lt.u32.totalorder %s752_s11, %s747_s16 }
  0x37   : > { %p750_p11 = pnand %p748_p9, %p719_p5  ;;  %p756_p10 = scmp.lt.u32.totalorder %s747_s16, %s1027_s15 }
  0x38   : > { %p755_p4 = por %p754_p6, %p753_p3 }
  0x39   : > { %p751_p13 = pneg %p750_p11 }
  0x3a   : > { %p757_p12 = por %p756_p10, %p755_p4 }
  0x3c   : > { %p758_p1 = pnand %p757_p12, %p751_p13 }
  0x3e   : > { %761 = shalt.err (!%p758_p1)
}
  0x3f   : > { %s762_s9 = scalar_lea.vmem %s246_s29, 128  ;;  %s866_s10 = smov [#allocation5]  }
  0x40   : > { %p763_p2 = scmp.ne.s32.totalorder %s246_s29, %s762_s9  ;;  %s767_s27 = sshll.u32 %s866_s10, 4  ;;  %s768_s27 = int_to_ptr.vmem [resolvable:$false] %s767_s27 }
  0x41   : > { %s769_s24 = scalar_lea.vmem %s768_s27, 256  ;;  %p770_p8 = scmp.lt.s32.totalorder %s246_s29, %s768_s27 }
  0x42   : > { %p765_p9 = pnand %p763_p2, %p719_p5  ;;  %p771_p7 = scmp.lt.s32.totalorder %s769_s24, %s762_s9 }
  0x44   : > { %p766_p11 = pneg %p765_p9  ;;  %p772_p3 = por %p771_p7, %p770_p8 }
  0x46   : > { %p773_p6 = pnand %p772_p3, %p766_p11 }
  0x48   : > { %776 = shalt.err (!%p773_p6)
}
  0x49   : > { %657 = dma.hbm_to_vmem [thread:$0]  (!%p982_p0), %s1027_s15, 128, %s246_s29, %s232_s14  }
  0x4a   : > { %p1150_p13 = scmp.ne.s32.totalorder %s1149_s25, 0 }
  0x4b   : > { %s1054_s16 = sand.u32 (!%p1150_p13), 1, %s847_s19   ;;  %p1151_p8 = scmp.ne.s32.totalorder (!%p1150_p13), %s1143_s30, 0 }
  0x4c   : > { %254 = sbr.rel (%p1150_p13) target bundleno = 329 (0x149), region = 40  ;;  %s1057_s12 = sshll.u32 (!%p1150_p13), %s1054_s16, 3 }
  0x4d   : > { %s257_s11 = scalar_lea.sflag (!%p1150_p13), [#allocation3], %s1054_s16  ;;  %s260_s28 = scalar_lea.vmem (!%p1150_p13), [#allocation2], %s1057_s12 }
  0x53   : > { %830 = dma.done.wait (%p1151_p8), %s257_s11, 128  }
  0x54   : > { %832 = vsyncadd (%p1151_p8), %s257_s11, 4294967168  ;;  %s266_s17 = scalar_lea.sflag [#allocation6], %s1054_s16  ;;  %s269_s25 = scalar_lea.vmem [#allocation5], %s1057_s12 }
  0x55   : > { %834 = dma.done.wait (%p1151_p8), %s266_s17, 128  }
  0x56   : > { %836 = vsyncadd (%p1151_p8), %s266_s17, 4294967168  ;;  %v867_v0 = vmov 0.0   ;;  %v868_v1 = vmov 0   ;;  %v308_v2 = vld [vmem:[%s269_s25] sm:$0xff]  ;;  %vm315_vm0 = vcmask 1043456   ;;  %v305_v3 = vld [vmem:[%s260_s28] sm:$0xff] }
  0x57   : > { %384 = vmatprep.mubr.f32.mxu1 %v867_v0  ;;  %464 = vmatprep.mubr.f32.mxu0 %v867_v0  ;;  %v310_v4 = vcombine.high %v308_v2, %v308_v2  ;;  %v392_v5 = vcombine.high %v305_v3, %v305_v3  ;;  %v304_v6 = vld [vmem:[%s1138_s4] sm:$0xf]  ;;  %vm311_vm1 = vcmask 31744   ;;  %s642_s10 = sshll.u32 %s855_s21, 7  ;;  %s300_s27 = scalar_lea.vmem [#allocation7], %s1057_s12 }
  0x58   : > { %714 = vset.pattern.permute.xlu0 %v868_v1  ;;  %v307_v7 = vld [vmem:[%s1137_s3] sm:$0xf]  ;;  %s505_s24 = sshll.u32 %s300_s27, 4  ;;  %s1085_s17 = scalar_lea.hbm %s1139_s5, %s642_s10  ;;  %s1087_s24 = int_to_ptr.vmem [resolvable:$true] %s505_s24 }
  0x59   : > { %v306_v8 = vld [vmem:[%s1136_s2] sm:$0xf]  ;;  %473 = vperm.xlu0 %714, %v304_v6   ;;  %629 = vmatprep.subr.msk.mxu1 %vm315_vm0, %v310_v4  ;;  %s489_s25 = scalar_lea.sflag [#allocation4], %s1054_s16  ;;  %s777_s15 = scalar_lea.vmem %s1087_s24, 128 }
  0x5a   : > { %632 = vmatprep.subr.msk.mxu0 %vm315_vm0, %v392_v5  ;;  %630 = vmatpush1.msk.msra.mxu1 %vm315_vm0, %v308_v2  ;;  %p778_p0 = scmp.ne.s32.totalorder %s1087_s24, %s777_s15  ;;  %p1152_p5 = scmp.ne.s32.totalorder %s1144_s6, 0 }
  0x5b   : > { %633 = vmatpush1.msk.msra.mxu0 %vm315_vm0, %v305_v3  ;;  %631 = vmatmul.mubr.msk.f32.vlgmr.msra.gmra.mrb[0].mxu1 %vm311_vm1, %v307_v7  ;;  %s869_s21 = smov [#allocation7]  }
  0x5c   : > { %634 = vmatmul.mubr.msk.f32.vlgmr.msra.gmra.mrb[0].mxu0 %vm311_vm1, %v306_v8  ;;  %p779_p7 = pnand %p778_p0, %p1152_p5  ;;  %s781_s12 = sshll.u32 %s869_s21, 4  ;;  %s782_s12 = int_to_ptr.vmem [resolvable:$false] %s781_s12 }
  0x5d   : > { %s783_s29 = scalar_lea.vmem %s782_s12, 256  ;;  %p784_p10 = scmp.lt.s32.totalorder %s1087_s24, %s782_s12 }
  0x5e   : > { %p780_p4 = pneg %p779_p7  ;;  %p785_p12 = scmp.lt.s32.totalorder %s783_s29, %s777_s15 }
  0x60   : > { %p786_p1 = por %p785_p12, %p784_p10 }
  0x62   : > { %p787_p2 = pnand %p786_p1, %p780_p4 }
  0xd8   : > { %v474_v9 = vpop.permute.xlu0 %473 }
 0x12e   : > { %v386_v10 = vpop.f32.mrb[0].mxu1 }
 0x12f   : > { %v466_v11 = vpop.f32.mrb[0].mxu0  ;;  %v388_v13 = vpop.f32.mrb[1].mxu1 }
 0x130   : > { %v467_v12 = vadd.f32 %v466_v11, %v386_v10  ;;  %v468_v14 = vpop.f32.mrb[1].mxu0 }
 0x131   : > { %v469_v15 = vadd.f32 %v468_v14, %v388_v13 }
 0x132   : > { %v476_v16 = vadd.f32 %v474_v9, %v467_v12 }
 0x133   : > { %v477_v17 = vadd.f32 %v474_v9, %v469_v15 }
 0x134   : > { %v479_v18 = vadd.f32 %v476_v16, %v305_v3 }
 0x135   : > { %v480_v19 = vadd.f32 %v477_v17, %v392_v5 }
 0x136   : > { %v481_v20 = vmax.f32 %v479_v18, 0.0 }
 0x137   : > { %v482_v21 = vmax.f32 %v480_v19, 0.0 }
 0x139   : > { %v485_v22 = vcombine.low %v481_v20, %v482_v21 }
 0x13b   : > { %487 = vst [vmem:[%s300_s27] sm:$0xff] %v485_v22 }
 0x13c   : > { %790 = shalt.err (!%p787_p2)
}
 0x13d   : > { %s791_s16 = scalar_lea.hbm %s1085_s17, 128  ;;  %s795_s30 = scalar_lea.hbm %s1139_s5, 256 }
 0x13e   : > { %p792_p9 = scmp.ne.s32.totalorder %s1085_s17, %s791_s16  ;;  %p796_p6 = scmp.lt.u32.totalorder %s1085_s17, %s1139_s5 }
 0x13f   : > { %p797_p13 = scmp.lt.u32.totalorder %s795_s30, %s791_s16  ;;  %p799_p0 = scmp.lt.u32.totalorder %s791_s16, %s1085_s17 }
 0x140   : > { %p793_p11 = pnand %p792_p9, %p1152_p5 }
 0x141   : > { %p798_p8 = por %p797_p13, %p796_p6 }
 0x142   : > { %p794_p3 = pneg %p793_p11 }
 0x143   : > { %p800_p7 = por %p799_p0, %p798_p8 }
 0x145   : > { %p801_p4 = pnand %p800_p7, %p794_p3 }
 0x147   : > { %804 = shalt.err (!%p801_p4)
}
 0x148   : > { %649 = dma.vmem_to_hbm [thread:$0]  (%p1152_p5), %s1087_s24, 128, %s1085_s17, %s489_s25  }
 0x149 PF: > { %s517_s27 = sand.u32 1, %s843_s18   ;;  %p1153_p10 = scmp.ne.s32.totalorder %s1145_s8, 0 }
 0x14a   : > { %p1154_p12 = scmp.ge.s32.totalorder %s863_s23, 2  ;;  %s518_s11 = scalar_lea.sflag [#allocation4], %s517_s27 }
 0x14c   : > { %p659_p1 = pnand %p1154_p12, %p1153_p10 }
 0x14e   : > { %838 = dma.done.wait (!%p659_p1), %s518_s11, 128  }
 0x14f   : > { %840 = vsyncadd (!%p659_p1), %s518_s11, 4294967168  ;;  %s24_s23 = sadd.s32 1, %s863_s23   ;;  %s1155_s18 = smov %s847_s19 }
 0x150   : > { %p21_p2 = scmp.ge.s32.totalorder %s24_s23, 4   ;;  %s1156_s19 = smov %s851_s20 }
 0x151   : > { %s1157_s20 = smov %s956_s7  ;;  %s1158_s21 = smov %s859_s22 }
 0x152   : > { %s1159_s22 = smov %s1161_s26  ;;  %23 = sbr.rel (!%p21_p2) target bundleno = 8 (0x8), region = 98 }
 0x159   :  { %523 = vsyncpa [#allocation3], 1 }
 0x15a   :  { %525 = vsyncpa [#allocation3 + $0x1], 1 }
 0x15b   :  { %526 = vsyncpa [#allocation6], 1 }
 0x15c   :  { %528 = vsyncpa [#allocation6 + $0x1], 1 }
 0x15d   :  { %529 = vsyncpa [#allocation4], 1 }
 0x15e   :  { %531 = vsyncpa [#allocation4 + $0x1], 1 }

</bundles_post_ra>
